<compile_context>
chip_gen: v7x
topology: tpu7x:2x2x1
jax: 0.10.0
libtpu: 0.0.40
codegen_flags: <defaults>
</compile_context>

<pallas_src>
import functools

import jax
import jax.numpy as jnp
from jax.experimental import pallas as pl
from jax.experimental.pallas import tpu as pltpu


# --------------------------------------------------------------------------- #
# Kernel
# --------------------------------------------------------------------------- #
def _conv1x1_bn_kernel(x_ref, w_ref, b_ref, o_ref, *, is_relu, cin, bn, use_mxu):
    # x_ref: (bn, Cin, TS)  activations, channels on sublanes / spatial on lanes
    # w_ref: (Cout, Cin)    conv weight with BN scale folded in (f32 or bf16)
    # b_ref: (Cout, 1)      folded BN bias (f32)
    # o_ref: (bn, Cout, TS)
    w = w_ref[...]
    bias = b_ref[...]                                   # (Cout, 1) f32
    if not use_mxu:
        w_f32 = w.astype(jnp.float32)                   # hoisted out of the loop
    for b in range(bn):                                 # bn is small & static
        x = x_ref[b]                                    # (Cin, TS)
        if use_mxu:
            # native-dtype MXU matmul, f32 accumulation
            acc = jnp.dot(w, x, preferred_element_type=jnp.float32)   # (Cout, TS)
        else:
            # tiny channel counts: unrolled VPU outer-product MAC
            xf = x.astype(jnp.float32)
            acc = w_f32[:, 0:1] * xf[0:1, :]
            for k in range(1, cin):
                acc = acc + w_f32[:, k:k + 1] * xf[k:k + 1, :]
        y = acc + bias                                  # epilogue stays f32 (v5e-safe)
        if is_relu:
            y = jnp.maximum(y, 0.0)
        o_ref[b] = y.astype(o_ref.dtype)


# --------------------------------------------------------------------------- #
# Tiling / budget helpers
# --------------------------------------------------------------------------- #
def _largest_divisor_leq(n, cap):
    cap = int(max(1, min(cap, n)))
    while n % cap:
        cap -= 1
    return cap


def _vmem_cap_bytes():
    # generation-aware cap: half of physical per-TC VMEM, clamped to [16, 64] MiB.
    cap = 64 << 20
    try:
        info = pltpu.get_tpu_info()
        cap = int(getattr(info, "vmem_capacity_bytes", cap))
    except Exception:
        pass
    return int(min(max(cap // 2, 16 << 20), 64 << 20))


def _choose_tiling(N, S, cin, cout, in_isz, out_isz, target, vmem_budget):
    """Pick (bn, ts) block sizes and the resulting grid (nb, n_s)."""
    # shrink the spatial target when Cout is large (f32 accumulator pressure)
    if cout >= 512:
        target = min(target, 512)
    elif cout >= 256:
        target = min(target, 1024)
    # bytes per (batch x spatial) element: double-buffered in/out + f32 temps
    per = 2 * (cin * in_isz + cout * out_isz) + (cin + 2 * cout) * 4
    max_elems = max(128, vmem_budget // per)
    target = max(128, min(target, (max_elems // 128) * 128))

    if S > target:
        # spatial tiling: prefer a 128-aligned divisor of S near the target
        base = max(128, (target // 128) * 128)
        ts = base
        for cand in range(base, max(127, base // 2 - 1), -128):
            if S % cand == 0:
                ts = cand
                break
        bn = 1
    else:
        # small spatial extent: block over the batch dim instead
        ts = S
        s_pad = max(128, ((S + 127) // 128) * 128)
        bn = _largest_divisor_leq(N, max(1, target // s_pad))

    n_s = pl.cdiv(S, ts)
    nb = N // bn
    # megacore-friendly: keep at least 2 grid steps when the batch allows it
    if nb * n_s < 2 and N >= 2:
        bn = _largest_divisor_leq(N, max(1, N // 2))
        nb = N // bn
    return bn, ts, nb, n_s


# --------------------------------------------------------------------------- #
# Wrapper
# --------------------------------------------------------------------------- #
def conv1x1x1_bn(x, weight, gamma, beta, running_mean, running_var,
                 *, stride=1, padding=0, is_relu=True, eps=1e-5,
                 spatial_tile=2048):
    """x: [N, Cin, D, H, W] (NCDHW).  weight: [Cout, Cin] or Conv3d 5-D weight."""
    if weight.ndim == 5:                       # PyTorch Conv3d weight [Cout,Cin,1,1,1]
        weight = weight.reshape(weight.shape[0], weight.shape[1])
    if isinstance(stride, int):
        stride = (stride,) * 3
    if isinstance(padding, int):
        padding = (padding,) * 3

    # --- glue (plain JAX): padding + stride of the 1x1x1 conv ---------------
    pd, ph, pw = padding
    if any(p > 0 for p in padding):
        x = jnp.pad(x, ((0, 0), (0, 0), (pd, pd), (ph, ph), (pw, pw)))
    sd, sh, sw = stride
    if any(s > 1 for s in stride):
        x = x[:, :, ::sd, ::sh, ::sw]

    N, Cin, D, H, W = x.shape
    Cout = weight.shape[0]
    S = D * H * W
    x3d = x.reshape(N, Cin, S)                 # free reshape, keeps NC[S] layout

    # fold BatchNorm (inference) in f32
    inv_std = 1.0 / jnp.sqrt(running_var.astype(jnp.float32) + eps)
    scale = gamma.astype(jnp.float32) * inv_std                         # (Cout,)
    w_mat = weight.astype(jnp.float32) * scale[:, None]                 # (Cout, Cin)
    bias = (beta.astype(jnp.float32)
            - running_mean.astype(jnp.float32) * scale).reshape(Cout, 1)

    # MXU vs VPU: VPU outer-product MAC only when BOTH channel counts are tiny
    use_mxu = (Cin > 8) or (Cout >= 32) or (Cin * Cout >= 256)

    # feed native bf16 operands to the MXU (fold stays f32, single cast here)
    if use_mxu and x3d.dtype == jnp.bfloat16:
        w_mat = w_mat.astype(jnp.bfloat16)

    in_isz = jnp.dtype(x3d.dtype).itemsize
    out_isz = in_isz
    w_isz = jnp.dtype(w_mat.dtype).itemsize

    vmem_cap = _vmem_cap_bytes()
    bn, ts, nb, n_s = _choose_tiling(N, S, Cin, Cout, in_isz, out_isz,
                                     spatial_tile, vmem_budget=vmem_cap // 2)

    kernel = functools.partial(_conv1x1_bn_kernel, is_relu=is_relu,
                               cin=Cin, bn=bn, use_mxu=use_mxu)

    def build(nbuf):
        pm = {}
        if nbuf > 2 and hasattr(pl, "Buffered"):
            pm = dict(pipeline_mode=pl.Buffered(nbuf))
        # VMEM estimate includes the double-buffered weight/bias blocks too
        est = (nbuf * bn * ts * Cin * in_isz
               + nbuf * bn * ts * Cout * out_isz
               + 2 * Cout * Cin * w_isz + 2 * Cout * 4
               + (Cin + 2 * Cout) * ts * 4)
        vmem_limit = int(min(max(2 * est, 8 << 20), vmem_cap))
        return pl.pallas_call(
            kernel,
            out_shape=jax.ShapeDtypeStruct((N, Cout, S), x3d.dtype),
            grid_spec=pltpu.PrefetchScalarGridSpec(
                num_scalar_prefetch=0,
                grid=(nb, n_s),
                in_specs=[
                    pl.BlockSpec((bn, Cin, ts), lambda b, s: (b, 0, s), **pm),
                    pl.BlockSpec((Cout, Cin), lambda b, s: (0, 0)),
                    pl.BlockSpec((Cout, 1), lambda b, s: (0, 0)),
                ],
                out_specs=pl.BlockSpec((bn, Cout, ts), lambda b, s: (b, 0, s), **pm),
            ),
            compiler_params=pltpu.CompilerParams(
                dimension_semantics=("parallel", "parallel"),
                vmem_limit_bytes=vmem_limit),
        )

    # deeper pipeline only where per-step compute is tiny and DMA latency shows
    want_deep = (max(nb, n_s) >= 3) and (Cin * Cout <= 2048)
    if want_deep:
        try:
            out3d = build(3)(x3d, w_mat, bias)
        except Exception:
            out3d = build(2)(x3d, w_mat, bias)   # safe fallback to default depth
    else:
        out3d = build(2)(x3d, w_mat, bias)

    return out3d.reshape(N, Cout, D, H, W)


# --------------------------------------------------------------------------- #
# Pure-JAX reference (same semantics as the PyTorch module, eval-mode BN)
# --------------------------------------------------------------------------- #
def _reference(x, weight, gamma, beta, running_mean, running_var,
               *, stride=1, padding=0, is_relu=True, eps=1e-5):
    if weight.ndim == 5:
        weight = weight.reshape(weight.shape[0], weight.shape[1])
    if isinstance(stride, int):
        stride = (stride,) * 3
    if isinstance(padding, int):
        padding = (padding,) * 3
    pd, ph, pw = padding
    if any(p > 0 for p in padding):
        x = jnp.pad(x, ((0, 0), (0, 0), (pd, pd), (ph, ph), (pw, pw)))
    sd, sh, sw = stride
    if any(s > 1 for s in stride):
        x = x[:, :, ::sd, ::sh, ::sw]
    xf = x.astype(jnp.float32)
    y = jnp.einsum("ncdhw,oc->nodhw", xf, weight.astype(jnp.float32))
    inv_std = 1.0 / jnp.sqrt(running_var.astype(jnp.float32) + eps)
    scale = (gamma.astype(jnp.float32) * inv_std)[None, :, None, None, None]
    bias = (beta.astype(jnp.float32)
            - running_mean.astype(jnp.float32) * gamma.astype(jnp.float32)
            * inv_std)[None, :, None, None, None]
    y = y * scale + bias
    if is_relu:
        y = jnp.maximum(y, 0.0)
    return y


if __name__ == "__main__":
    key = jax.random.PRNGKey(0)
    ks = jax.random.split(key, 12)

    # --- test 1: module config (in=4, out=8, stride=1, padding=0, relu) -----
    N, Cin, Cout, D, H, W = 4, 4, 8, 4, 8, 8
    x = jax.random.normal(ks[0], (N, Cin, D, H, W), dtype=jnp.float32)
    weight = jax.random.normal(ks[1], (Cout, Cin), dtype=jnp.float32) * 0.1
    gamma = jax.random.normal(ks[2], (Cout,), dtype=jnp.float32) * 0.1 + 1.0
    beta = jax.random.normal(ks[3], (Cout,), dtype=jnp.float32) * 0.1
    rmean = jax.random.normal(ks[4], (Cout,), dtype=jnp.float32) * 0.1
    rvar = jnp.abs(jax.random.normal(ks[5], (Cout,), dtype=jnp.float32)) * 0.1 + 1.0

    out = conv1x1x1_bn(x, weight, gamma, beta, rmean, rvar,
                       stride=1, padding=0, is_relu=True)
    out = jax.block_until_ready(out)
    ref = _reference(x, weight, gamma, beta, rmean, rvar,
                     stride=1, padding=0, is_relu=True)
    assert out.shape == ref.shape == (N, Cout, D, H, W), out.shape
    assert jnp.allclose(out, ref, atol=1e-4, rtol=1e-4), \
        float(jnp.max(jnp.abs(out - ref)))

    # --- test 2: stride=2, padding=1, no relu (conv glue path) --------------
    N2, Ci2, Co2, D2, H2, W2 = 2, 3, 16, 5, 9, 9
    x2 = jax.random.normal(ks[6], (N2, Ci2, D2, H2, W2), dtype=jnp.float32)
    w2 = jax.random.normal(ks[7], (Co2, Ci2), dtype=jnp.float32) * 0.1
    g2 = jnp.ones((Co2,), jnp.float32)
    b2 = jnp.zeros((Co2,), jnp.float32)
    m2 = jax.random.normal(ks[8], (Co2,), dtype=jnp.float32) * 0.1
    v2 = jnp.abs(jax.random.normal(ks[9], (Co2,), dtype=jnp.float32)) * 0.1 + 1.0
    out2 = jax.block_until_ready(
        conv1x1x1_bn(x2, w2, g2, b2, m2, v2, stride=2, padding=1, is_relu=False))
    ref2 = _reference(x2, w2, g2, b2, m2, v2, stride=2, padding=1, is_relu=False)
    assert out2.shape == ref2.shape, (out2.shape, ref2.shape)
    assert jnp.allclose(out2, ref2, atol=1e-4, rtol=1e-4), \
        float(jnp.max(jnp.abs(out2 - ref2)))

    # --- test 3: bf16 activations on the MXU path ---------------------------
    N3, Ci3, Co3, D3, H3, W3 = 2, 16, 32, 2, 8, 8
    x3 = jax.random.normal(ks[10], (N3, Ci3, D3, H3, W3),
                           dtype=jnp.float32).astype(jnp.bfloat16)
    w3 = jax.random.normal(ks[11], (Co3, Ci3), dtype=jnp.float32) * 0.1
    g3 = jnp.ones((Co3,), jnp.float32)
    bb3 = jnp.zeros((Co3,), jnp.float32)
    m3 = jnp.zeros((Co3,), jnp.float32)
    v3 = jnp.ones((Co3,), jnp.float32)
    out3 = jax.block_until_ready(
        conv1x1x1_bn(x3, w3, g3, bb3, m3, v3, stride=1, padding=0, is_relu=True))
    ref3 = _reference(x3.astype(jnp.float32), w3, g3, bb3, m3, v3, is_relu=True)
    assert out3.shape == ref3.shape
    assert jnp.allclose(out3.astype(jnp.float32), ref3, atol=1e-1, rtol=1e-1), \
        float(jnp.max(jnp.abs(out3.astype(jnp.float32) - ref3)))

    print("KERNEL_OK")
</pallas_src>

<mosaic_0001>
module attributes {stable_mosaic.version = 11 : i64} {
  func.func @_conv1x1_bn_kernel(%arg0: i32, %arg1: i32, %arg2: memref<2x4x256xf32, #tpu.memory_space<vmem>>, %arg3: memref<8x4xf32, #tpu.memory_space<vmem>>, %arg4: memref<8x1xf32, #tpu.memory_space<vmem>>, %arg5: memref<2x8x256xf32, #tpu.memory_space<vmem>>) attributes {dimension_semantics = [#tpu.dimension_semantics<parallel>, #tpu.dimension_semantics<parallel>], iteration_bounds = array<i64: 2, 1>, scalar_prefetch = 0 : i64, scratch_operands = 0 : i64, tpu.core_type = #tpu.core_type<tc>, window_params = [{transform_indices = @transform_0, window_bounds = array<i64: 2, 4, 256>}, {pipeline_mode = #tpu.pipeline_mode<synchronous>, transform_indices = @transform_1, window_bounds = array<i64: 8, 4>}, {pipeline_mode = #tpu.pipeline_mode<synchronous>, transform_indices = @transform_2, window_bounds = array<i64: 8, 1>}, {transform_indices = @transform_3, window_bounds = array<i64: 2, 8, 256>}]} {
    %c0 = arith.constant 0 : index
    %c0_0 = arith.constant 0 : index
    %0 = vector.load %arg3[%c0, %c0_0] : memref<8x4xf32, #tpu.memory_space<vmem>>, vector<8x4xf32>
    %c0_1 = arith.constant 0 : index
    %c0_2 = arith.constant 0 : index
    %1 = vector.load %arg4[%c0_1, %c0_2] : memref<8x1xf32, #tpu.memory_space<vmem>>, vector<8x1xf32>
    %c0_3 = arith.constant 0 : index
    %c0_4 = arith.constant 0 : index
    %c0_5 = arith.constant 0 : index
    %2 = vector.load %arg2[%c0_3, %c0_4, %c0_5] : memref<2x4x256xf32, #tpu.memory_space<vmem>>, vector<1x4x256xf32>
    %3 = vector.shape_cast %2 : vector<1x4x256xf32> to vector<4x256xf32>
    %4 = vector.extract_strided_slice %0 {offsets = [0, 0], sizes = [8, 1], strides = [1, 1]} : vector<8x4xf32> to vector<8x1xf32>
    %5 = vector.extract_strided_slice %3 {offsets = [0, 0], sizes = [1, 256], strides = [1, 1]} : vector<4x256xf32> to vector<1x256xf32>
    %6 = vector.broadcast %4 : vector<8x1xf32> to vector<8x256xf32>
    %7 = vector.broadcast %5 : vector<1x256xf32> to vector<8x256xf32>
    %8 = arith.mulf %6, %7 : vector<8x256xf32>
    %9 = vector.extract_strided_slice %0 {offsets = [0, 1], sizes = [8, 1], strides = [1, 1]} : vector<8x4xf32> to vector<8x1xf32>
    %10 = vector.extract_strided_slice %3 {offsets = [1, 0], sizes = [1, 256], strides = [1, 1]} : vector<4x256xf32> to vector<1x256xf32>
    %11 = vector.broadcast %9 : vector<8x1xf32> to vector<8x256xf32>
    %12 = vector.broadcast %10 : vector<1x256xf32> to vector<8x256xf32>
    %13 = arith.mulf %11, %12 : vector<8x256xf32>
    %14 = arith.addf %8, %13 : vector<8x256xf32>
    %15 = vector.extract_strided_slice %0 {offsets = [0, 2], sizes = [8, 1], strides = [1, 1]} : vector<8x4xf32> to vector<8x1xf32>
    %16 = vector.extract_strided_slice %3 {offsets = [2, 0], sizes = [1, 256], strides = [1, 1]} : vector<4x256xf32> to vector<1x256xf32>
    %17 = vector.broadcast %15 : vector<8x1xf32> to vector<8x256xf32>
    %18 = vector.broadcast %16 : vector<1x256xf32> to vector<8x256xf32>
    %19 = arith.mulf %17, %18 : vector<8x256xf32>
    %20 = arith.addf %14, %19 : vector<8x256xf32>
    %21 = vector.extract_strided_slice %0 {offsets = [0, 3], sizes = [8, 1], strides = [1, 1]} : vector<8x4xf32> to vector<8x1xf32>
    %22 = vector.extract_strided_slice %3 {offsets = [3, 0], sizes = [1, 256], strides = [1, 1]} : vector<4x256xf32> to vector<1x256xf32>
    %23 = vector.broadcast %21 : vector<8x1xf32> to vector<8x256xf32>
    %24 = vector.broadcast %22 : vector<1x256xf32> to vector<8x256xf32>
    %25 = arith.mulf %23, %24 : vector<8x256xf32>
    %26 = arith.addf %20, %25 : vector<8x256xf32>
    %27 = vector.broadcast %1 : vector<8x1xf32> to vector<8x256xf32>
    %28 = arith.addf %26, %27 : vector<8x256xf32>
    %cst = arith.constant 0.000000e+00 : f32
    %29 = vector.broadcast %cst : f32 to vector<8x256xf32>
    %30 = arith.maximumf %28, %29 : vector<8x256xf32>
    %c0_6 = arith.constant 0 : index
    %c0_7 = arith.constant 0 : index
    %c0_8 = arith.constant 0 : index
    %31 = vector.load %arg5[%c0_6, %c0_7, %c0_8] : memref<2x8x256xf32, #tpu.memory_space<vmem>>, vector<1x8x256xf32>
    %32 = vector.shape_cast %31 : vector<1x8x256xf32> to vector<8x256xf32>
    %33 = vector.shape_cast %30 : vector<8x256xf32> to vector<1x8x256xf32>
    tpu.vector_store %arg5[%c0_6, %c0_7, %c0_8], %33 {strides = array<i32>} : memref<2x8x256xf32, #tpu.memory_space<vmem>>, vector<1x8x256xf32>,
    %c1 = arith.constant 1 : index
    %c0_9 = arith.constant 0 : index
    %c0_10 = arith.constant 0 : index
    %34 = vector.load %arg2[%c1, %c0_9, %c0_10] : memref<2x4x256xf32, #tpu.memory_space<vmem>>, vector<1x4x256xf32>
    %35 = vector.shape_cast %34 : vector<1x4x256xf32> to vector<4x256xf32>
    %36 = vector.extract_strided_slice %0 {offsets = [0, 0], sizes = [8, 1], strides = [1, 1]} : vector<8x4xf32> to vector<8x1xf32>
    %37 = vector.extract_strided_slice %35 {offsets = [0, 0], sizes = [1, 256], strides = [1, 1]} : vector<4x256xf32> to vector<1x256xf32>
    %38 = vector.broadcast %36 : vector<8x1xf32> to vector<8x256xf32>
    %39 = vector.broadcast %37 : vector<1x256xf32> to vector<8x256xf32>
    %40 = arith.mulf %38, %39 : vector<8x256xf32>
    %41 = vector.extract_strided_slice %0 {offsets = [0, 1], sizes = [8, 1], strides = [1, 1]} : vector<8x4xf32> to vector<8x1xf32>
    %42 = vector.extract_strided_slice %35 {offsets = [1, 0], sizes = [1, 256], strides = [1, 1]} : vector<4x256xf32> to vector<1x256xf32>
    %43 = vector.broadcast %41 : vector<8x1xf32> to vector<8x256xf32>
    %44 = vector.broadcast %42 : vector<1x256xf32> to vector<8x256xf32>
    %45 = arith.mulf %43, %44 : vector<8x256xf32>
    %46 = arith.addf %40, %45 : vector<8x256xf32>
    %47 = vector.extract_strided_slice %0 {offsets = [0, 2], sizes = [8, 1], strides = [1, 1]} : vector<8x4xf32> to vector<8x1xf32>
    %48 = vector.extract_strided_slice %35 {offsets = [2, 0], sizes = [1, 256], strides = [1, 1]} : vector<4x256xf32> to vector<1x256xf32>
    %49 = vector.broadcast %47 : vector<8x1xf32> to vector<8x256xf32>
    %50 = vector.broadcast %48 : vector<1x256xf32> to vector<8x256xf32>
    %51 = arith.mulf %49, %50 : vector<8x256xf32>
    %52 = arith.addf %46, %51 : vector<8x256xf32>
    %53 = vector.extract_strided_slice %0 {offsets = [0, 3], sizes = [8, 1], strides = [1, 1]} : vector<8x4xf32> to vector<8x1xf32>
    %54 = vector.extract_strided_slice %35 {offsets = [3, 0], sizes = [1, 256], strides = [1, 1]} : vector<4x256xf32> to vector<1x256xf32>
    %55 = vector.broadcast %53 : vector<8x1xf32> to vector<8x256xf32>
    %56 = vector.broadcast %54 : vector<1x256xf32> to vector<8x256xf32>
    %57 = arith.mulf %55, %56 : vector<8x256xf32>
    %58 = arith.addf %52, %57 : vector<8x256xf32>
    %59 = vector.broadcast %1 : vector<8x1xf32> to vector<8x256xf32>
    %60 = arith.addf %58, %59 : vector<8x256xf32>
    %cst_11 = arith.constant 0.000000e+00 : f32
    %61 = vector.broadcast %cst_11 : f32 to vector<8x256xf32>
    %62 = arith.maximumf %60, %61 : vector<8x256xf32>
    %c1_12 = arith.constant 1 : index
    %c0_13 = arith.constant 0 : index
    %c0_14 = arith.constant 0 : index
    %63 = vector.load %arg5[%c1_12, %c0_13, %c0_14] : memref<2x8x256xf32, #tpu.memory_space<vmem>>, vector<1x8x256xf32>
    %64 = vector.shape_cast %63 : vector<1x8x256xf32> to vector<8x256xf32>
    %65 = vector.shape_cast %62 : vector<8x256xf32> to vector<1x8x256xf32>
    tpu.vector_store %arg5[%c1_12, %c0_13, %c0_14], %65 {strides = array<i32>} : memref<2x8x256xf32, #tpu.memory_space<vmem>>, vector<1x8x256xf32>,
    return
  }
  func.func @transform_0(%arg0: i32, %arg1: i32) -> (i32, i32, i32) {
    %c0_i32 = arith.constant 0 : i32
    %c0_i32_0 = arith.constant 0 : i32
    return %arg0, %c0_i32, %arg1 : i32, i32, i32
  }
  func.func @transform_1(%arg0: i32, %arg1: i32) -> (i32, i32) {
    %c0_i32 = arith.constant 0 : i32
    %c0_i32_0 = arith.constant 0 : i32
    %c0_i32_1 = arith.constant 0 : i32
    return %c0_i32, %c0_i32_0 : i32, i32
  }
  func.func @transform_2(%arg0: i32, %arg1: i32) -> (i32, i32) {
    %c0_i32 = arith.constant 0 : i32
    %c0_i32_0 = arith.constant 0 : i32
    %c0_i32_1 = arith.constant 0 : i32
    return %c0_i32, %c0_i32_0 : i32, i32
  }
  func.func @transform_3(%arg0: i32, %arg1: i32) -> (i32, i32, i32) {
    %c0_i32 = arith.constant 0 : i32
    %c0_i32_0 = arith.constant 0 : i32
    return %arg0, %c0_i32, %arg1 : i32, i32, i32
  }
}

</mosaic_0001>

<bundles_post_ra>
// kernel: tpu_custom_call.1
= control target key start
LH: loop header
LB: loop body
LE: loop exit
PB: predicated region body
PF: predicated region fallthrough
CT: control target
= control target key end

     0   :  { %8 = vsyncpa [#allocation3], 0  ;;  %s956_s0 = inlined_call_operand.hbm [shape: f32[4,4,256], index: 0, kind: input, shape index: {}]   ;;  %s957_s1 = inlined_call_operand.vmem [shape: f32[8,4], index: 1, kind: input, shape index: {}]   ;;  %s958_s2 = inlined_call_operand.vmem [shape: f32[8,1], index: 2, kind: input, shape index: {}]   ;;  %s959_s3 = inlined_call_operand.hbm [shape: f32[4,8,256], index: 3, kind: output, shape index: {}]  }
   0x1   :  { %10 = vsyncpa [#allocation3 + $0x1], 0 }
   0x2   :  { %11 = vsyncpa [#allocation4], 0 }
   0x3   :  { %13 = vsyncpa [#allocation4 + $0x1], 0  ;;  %s774_s12 = smov 0   ;;  %s776_s13 = smov 0  }
   0x4   :  { %s778_s14 = smov 0   ;;  %s780_s15 = smov 0  }
   0x5   :  { %s782_s16 = smov 0   ;;  %s784_s17 = smov 0  }
   0x6 LB: > { %s530_s18 = sadd.s32 4294967295, %s742_s17   ;;  %s531_s19 = sadd.s32 4294967294, %s742_s17   ;;  %s742_s17 = sphi %s784_s17, %s19_s17   ;;  %s738_s16 = sphi %s782_s16, %s974_s16   ;;  %s734_s15 = sphi %s780_s15, %s973_s15   ;;  %s730_s14 = sphi %s778_s14, %s972_s14   ;;  %s726_s13 = sphi %s776_s13, %s971_s13   ;;  %s722_s12 = sphi %s774_s12, %s970_s12  }
   0x7   : > { %s31_s20 = sadd.s32 1, %s738_s16  ;;  %s40_s21 = sadd.s32 1, %s730_s14 }
   0x8   : > { %p33_p0 = scmp.ge.s32.totalorder %s31_s20, 2  ;;  %p47_p1 = scmp.ne.s32.totalorder %s730_s14, %s726_s13 }
   0x9   : > { %p48_p2 = scmp.eq.s32.totalorder %s742_s17, 0  ;;  %p53_p3 = scmp.ne.s32.totalorder %s726_s13, %s722_s12 }
   0xa   : > { %s976_s20 = smov (%p33_p0, %s31_s20), 0  ;;  %p54_p5 = scmp.eq.s32.totalorder %s530_s18, 0 }
   0xb   : > { %p815_p4 = por %p48_p2, %p47_p1  ;;  %s35_s23 = ssub.s32 %s738_s16, %s976_s20 }
   0xc   : > { %p121_p6 = scmp.eq.s32.totalorder %s530_s18, 1  ;;  %p38_p7 = scmp.eq.s32.totalorder %s35_s23, 0 }
   0xd   : > { %p821_p8 = por %p54_p5, %p53_p3  ;;  %p127_p10 = scmp.eq.s32.totalorder %s531_s19, 1 }
   0xe   : > { %p825_p9 = por %p121_p6, %p47_p1  ;;  %p566_p13 = scmp.lt.s32.totalorder %s742_s17, 2 }
   0xf   : > { %s830_s26 = scalar_select %p38_p7, %s730_s14, %s40_s21  }
  0x10   : > { %s963_s25 = scalar_select %p825_p9, 1, 0 }
  0x11   : > { %p832_p11 = por %p127_p10, %p53_p3  ;;  %s153_s28 = sand.u32 1, %s730_s14  }
  0x12   : > { %s534_s29 = sshll.u32 %s153_s28, 4  ;;  %s551_s30 = sshll.u32 %s738_s16, 8 }
  0x13   : > { %s964_s27 = scalar_select %p832_p11, 1, 0 }
  0x14   : > { %s843_s6 = scalar_lea.hbm %s956_s0, %s551_s30  ;;  %s157_s7 = scalar_lea.vmem [#allocation2], %s534_s29 }
  0x15   : > { %s167_s8 = sshll.u32 %s157_s7, 4  ;;  %p849_p0 = pnand %p566_p13, %p815_p4  ;;  %s845_s8 = int_to_ptr.vmem [resolvable:$true] %s167_s8 }
  0x16   : > { %s854_s10 = scalar_lea.sflag [#allocation3], %s153_s28  ;;  %s630_s11 = scalar_lea.hbm %s843_s6, 256 }
  0x17   : > { %p631_p2 = scmp.ne.s32.totalorder %s843_s6, %s630_s11  ;;  %p632_p3 = pneg %p849_p0 }
  0x18   : > { %s635_s21 = scalar_lea.hbm %s956_s0, 512  ;;  %p636_p4 = scmp.lt.u32.totalorder %s843_s6, %s956_s0 }
  0x19   : > { %p633_p5 = pnand %p632_p3, %p631_p2  ;;  %p637_p7 = scmp.lt.u32.totalorder %s635_s21, %s630_s11 }
  0x1a   : > { %p639_p13 = scmp.lt.u32.totalorder %s630_s11, %s843_s6 }
  0x1b   : > { %p634_p6 = pneg %p633_p5  ;;  %p638_p10 = por %p637_p7, %p636_p4 }
  0x1d   : > { %p640_p12 = por %p639_p13, %p638_p10 }
  0x1f   : > { %p641_p1 = pnand %p640_p12, %p634_p6 }
  0x21   : > { %644 = shalt.err (!%p641_p1)
}
  0x22   : > { %s645_s28 = scalar_lea.vmem %s845_s8, 256  ;;  %s744_s29 = smov [#allocation2]  }
  0x23   : > { %p646_p2 = scmp.ne.s32.totalorder %s845_s8, %s645_s28  ;;  %s650_s30 = sshll.u32 %s744_s29, 4  ;;  %s651_s30 = int_to_ptr.vmem [resolvable:$false] %s650_s30 }
  0x24   : > { %s652_s4 = scalar_lea.vmem %s651_s30, 512  ;;  %p653_p9 = scmp.lt.s32.totalorder %s845_s8, %s651_s30 }
  0x25   : > { %p648_p5 = pnand %p646_p2, %p632_p3  ;;  %p654_p4 = scmp.lt.s32.totalorder %s652_s4, %s645_s28 }
  0x27   : > { %p649_p11 = pneg %p648_p5  ;;  %p655_p7 = por %p654_p4, %p653_p9 }
  0x29   : > { %p656_p10 = pnand %p655_p7, %p649_p11 }
  0x2b   : > { %659 = shalt.err (!%p656_p10)
}
  0x2c   : > { %s745_s5 = smov 128   ;;  %s746_s7 = smov 8  }
  0x2d   : > { %561 = dma.hbm_to_vmem [thread:$0]  (!%p849_p0), %s843_s6, 256, %s845_s8, %s854_s10, %s745_s5, %s745_s5, %s746_s7  }
  0x2e   : > { %p175_p12 = scmp.lt.s32.totalorder %s742_s17, 3  ;;  %p966_p1 = scmp.ge.s32.totalorder %s742_s17, 1 }
  0x30   : > { %p176_p3 = pnand %p966_p1, %p175_p12 }
  0x31   : > { %s886_s11 = sand.u32 (!%p176_p3), 1, %s726_s13  }
  0x32   : > { %179 = sbr.rel (%p176_p3) target bundleno = 221 (0xdd), region = 32  ;;  %s539_s18 = sshll.u32 (!%p176_p3), %s886_s11, 4 }
  0x33   : > { %s182_s19 = scalar_lea.sflag (!%p176_p3), [#allocation3], %s886_s11  ;;  %s185_s21 = scalar_lea.vmem (!%p176_p3), [#allocation2], %s539_s18 }
  0x39   : > { %713 = dma.done.wait (%p821_p8), %s182_s19, 256  }
  0x3a   : > { %715 = vsyncadd (%p821_p8), %s182_s19, 4294967040  ;;  %v747_v0 = vmov 0   ;;  %v748_v1 = vmov 2   ;;  %v212_v2 = vld [vmem:[%s957_s1] sm:$0xff]  ;;  %v749_v3 = vmov 1   ;;  %v750_v4 = vmov 3  }
  0x3b   : > { %624 = vset.pattern.permute.xlu0 %v747_v0  ;;  %626 = vset.pattern.permute.xlu1 %v748_v1  ;;  %v213_v5 = vld [vmem:[%s958_s2] sm:$0xff]  ;;  %v221_v6 = vlaneseq  ;;  %v541_v11 = vld [vmem:[%s185_s21 + $0x8] sm:$0xff]  ;;  %s540_s24 = sshll.u32 %s886_s11, 5  ;;  %s553_s28 = sshll.u32 %s734_s15, 9 }
  0x3c   : > { %217 = vperm.xlu0 %624, %v212_v2   ;;  %268 = vperm.xlu1 %626, %v212_v2   ;;  %v214_v10 = vld [vmem:[%s185_s21] sm:$0xff]  ;;  %s207_s22 = scalar_lea.vmem [#allocation5], %s540_s24  ;;  %s907_s4 = scalar_lea.hbm %s959_s3, %s553_s28 }
  0x3d   : > { %v222_v7 = vshrl.u32 %v221_v6, 7  ;;  %s443_s23 = sshll.u32 %s207_s22, 4  ;;  %s427_s15 = scalar_lea.sflag [#allocation4], %s886_s11  ;;  %s902_s23 = int_to_ptr.vmem [resolvable:$true] %s443_s23 }
  0x3e   : > { %s660_s5 = scalar_lea.vmem %s902_s23, 512  ;;  %p967_p9 = scmp.ne.s32.totalorder %s963_s25, 0 }
  0x3f   : > { %v223_v8 = vsub.s32 0, %v222_v7  ;;  %v227_v9 = vsub.s32 4, %v222_v7  ;;  %v273_v12 = vsub.s32 2, %v222_v7  ;;  %v277_v13 = vsub.s32 6, %v222_v7  ;;  %p661_p8 = scmp.ne.s32.totalorder %s902_s23, %s660_s5  ;;  %s751_s7 = smov [#allocation5]  }
  0x40   : > { %625 = vset.pattern.permute.xlu0 %v749_v3  ;;  %627 = vset.pattern.permute.xlu1 %v750_v4  ;;  %v247_v14 = vsub.s32 1, %v222_v7  ;;  %v251_v15 = vsub.s32 5, %v222_v7  ;;  %v299_v16 = vsub.s32 3, %v222_v7  ;;  %v303_v17 = vsub.s32 7, %v222_v7  ;;  %s664_s18 = sshll.u32 %s751_s7, 4  ;;  %s665_s18 = int_to_ptr.vmem [resolvable:$false] %s664_s18 }
  0x41   : > { %242 = vperm.xlu0 %625, %v212_v2   ;;  %294 = vperm.xlu1 %627, %v212_v2   ;;  %v224_v18 = vrot.slane %v214_v10, %v223_v8  ;;  %v228_v19 = vrot.slane %v214_v10, %v227_v9  ;;  %v336_v20 = vrot.slane %v541_v11, %v223_v8  ;;  %p662_p11 = pnand %p661_p8, %p967_p9  ;;  %s666_s19 = scalar_lea.vmem %s665_s18, 1024 }
  0x42   : > { %v340_v21 = vrot.slane %v541_v11, %v227_v9  ;;  %v274_v22 = vrot.slane %v214_v10, %v273_v12  ;;  %v278_v23 = vrot.slane %v214_v10, %v277_v13  ;;  %v378_v24 = vrot.slane %v541_v11, %v273_v12  ;;  %p667_p6 = scmp.lt.s32.totalorder %s902_s23, %s665_s18  ;;  %p668_p13 = scmp.lt.s32.totalorder %s666_s19, %s660_s5 }
  0x43   : > { %v382_v25 = vrot.slane %v541_v11, %v277_v13  ;;  %v248_v26 = vrot.slane %v214_v10, %v247_v14  ;;  %v252_v27 = vrot.slane %v214_v10, %v251_v15  ;;  %v356_v28 = vrot.slane %v541_v11, %v247_v14  ;;  %p663_p0 = pneg %p662_p11 }
  0x44   : > { %v360_v29 = vrot.slane %v541_v11, %v251_v15  ;;  %v300_v30 = vrot.slane %v214_v10, %v299_v16  ;;  %v304_v31 = vrot.slane %v214_v10, %v303_v17  ;;  %v400_v32 = vrot.slane %v541_v11, %v299_v16  ;;  %p669_p2 = por %p668_p13, %p667_p6 }
  0x45   : > { %628 = vset.pattern.permute.xlu1 %v747_v0  ;;  %629 = vset.pattern.permute.xlu0 %v747_v0  ;;  %v404_v33 = vrot.slane %v541_v11, %v303_v17  ;;  %v234_v34 = vrot.slane %v224_v18, %v223_v8  ;;  %v238_v35 = vrot.slane %v228_v19, %v223_v8 }
  0x46   : > { %321 = vperm.xlu1 %628, %v213_v5   ;;  %v346_v36 = vrot.slane %v336_v20, %v223_v8  ;;  %v350_v37 = vrot.slane %v340_v21, %v223_v8  ;;  %v284_v40 = vrot.slane %v274_v22, %v273_v12  ;;  %v288_v41 = vrot.slane %v278_v23, %v273_v12  ;;  %p670_p5 = pnand %p669_p2, %p663_p0 }
  0x47   : > { %v388_v42 = vrot.slane %v378_v24, %v273_v12  ;;  %v392_v43 = vrot.slane %v382_v25, %v273_v12  ;;  %v258_v44 = vrot.slane %v248_v26, %v247_v14  ;;  %v262_v45 = vrot.slane %v252_v27, %v247_v14 }
  0x48   : > { %v366_v46 = vrot.slane %v356_v28, %v247_v14  ;;  %v370_v47 = vrot.slane %v360_v29, %v247_v14  ;;  %v310_v48 = vrot.slane %v300_v30, %v299_v16  ;;  %v314_v49 = vrot.slane %v304_v31, %v299_v16 }
  0x49   : > { %v410_v50 = vrot.slane %v400_v32, %v299_v16  ;;  %v414_v51 = vrot.slane %v404_v33, %v299_v16 }
  0xbb   : > { %v218_v38 = vpop.permute.xlu0 %217  ;;  %v269_v39 = vpop.permute.xlu1 %268 }
  0xbc   : > { %v239_v52 = vmul.f32 %v234_v34, %v218_v38  ;;  %v240_v53 = vmul.f32 %v238_v35, %v218_v38  ;;  %v351_v54 = vmul.f32 %v346_v36, %v218_v38  ;;  %v352_v55 = vmul.f32 %v350_v37, %v218_v38 }
  0xbd   : > { %v289_v56 = vmul.f32 %v284_v40, %v269_v39  ;;  %v290_v57 = vmul.f32 %v288_v41, %v269_v39  ;;  %v393_v58 = vmul.f32 %v388_v42, %v269_v39  ;;  %v394_v59 = vmul.f32 %v392_v43, %v269_v39 }
  0xc0   : > { %v243_v60 = vpop.permute.xlu0 %242  ;;  %v295_v61 = vpop.permute.xlu1 %294 }
  0xc1   : > { %v263_v62 = vmul.f32 %v258_v44, %v243_v60  ;;  %v264_v63 = vmul.f32 %v262_v45, %v243_v60  ;;  %v371_v0 = vmul.f32 %v366_v46, %v243_v60  ;;  %v372_v1 = vmul.f32 %v370_v47, %v243_v60 }
  0xc2   : > { %v315_v2 = vmul.f32 %v310_v48, %v295_v61  ;;  %v316_v3 = vmul.f32 %v314_v49, %v295_v61  ;;  %v415_v4 = vmul.f32 %v410_v50, %v295_v61  ;;  %v416_v5 = vmul.f32 %v414_v51, %v295_v61 }
  0xc3   : > { %v265_v6 = vadd.f32 %v263_v62, %v239_v52  ;;  %v266_v7 = vadd.f32 %v264_v63, %v240_v53  ;;  %v373_v8 = vadd.f32 %v371_v0, %v351_v54  ;;  %v374_v9 = vadd.f32 %v372_v1, %v352_v55 }
  0xc5   : > { %v291_v10 = vadd.f32 %v289_v56, %v265_v6  ;;  %v292_v11 = vadd.f32 %v290_v57, %v266_v7  ;;  %v395_v12 = vadd.f32 %v393_v58, %v373_v8  ;;  %v396_v13 = vadd.f32 %v394_v59, %v374_v9  ;;  %v322_v14 = vpop.permute.xlu1 %321 }
  0xc7   : > { %v317_v15 = vadd.f32 %v315_v2, %v291_v10  ;;  %v318_v16 = vadd.f32 %v316_v3, %v292_v11  ;;  %v417_v17 = vadd.f32 %v415_v4, %v395_v12  ;;  %v418_v18 = vadd.f32 %v416_v5, %v396_v13 }
  0xc9   : > { %v324_v19 = vadd.f32 %v322_v14, %v317_v15  ;;  %v325_v20 = vadd.f32 %v322_v14, %v318_v16  ;;  %v419_v21 = vadd.f32 %v417_v17, %v322_v14  ;;  %v420_v22 = vadd.f32 %v418_v18, %v322_v14 }
  0xcb   : > { %v326_v23 = vmax.f32 %v324_v19, 0.0  ;;  %v327_v24 = vmax.f32 %v325_v20, 0.0  ;;  %v421_v25 = vmax.f32 %v419_v21, 0.0  ;;  %v422_v26 = vmax.f32 %v420_v22, 0.0 }
  0xcd   : > { %328 = vst [vmem:[%s207_s22] sm:$0xff] %v326_v23  ;;  %329 = vst [vmem:[%s207_s22 + $0x8] sm:$0xff] %v327_v24 }
  0xce   : > { %542 = vst [vmem:[%s207_s22 + $0x10] sm:$0xff] %v421_v25  ;;  %543 = vst [vmem:[%s207_s22 + $0x18] sm:$0xff] %v422_v26 }
  0xcf   : > { %673 = shalt.err (!%p670_p5)
}
  0xd0   : > { %s674_s21 = scalar_lea.hbm %s907_s4, 512  ;;  %s678_s9 = scalar_lea.hbm %s959_s3, 1024 }
  0xd1   : > { %p675_p4 = scmp.ne.s32.totalorder %s907_s4, %s674_s21  ;;  %p679_p12 = scmp.lt.u32.totalorder %s907_s4, %s959_s3 }
  0xd2   : > { %p680_p1 = scmp.lt.u32.totalorder %s678_s9, %s674_s21  ;;  %p682_p8 = scmp.lt.u32.totalorder %s674_s21, %s907_s4 }
  0xd3   : > { %p676_p7 = pnand %p675_p4, %p967_p9 }
  0xd4   : > { %p681_p3 = por %p680_p1, %p679_p12 }
  0xd5   : > { %p677_p10 = pneg %p676_p7 }
  0xd6   : > { %p683_p11 = por %p682_p8, %p681_p3 }
  0xd8   : > { %p684_p0 = pnand %p683_p11, %p677_p10 }
  0xda   : > { %687 = shalt.err (!%p684_p0)
}
  0xdb   : > { %s752_s22 = smov 256   ;;  %s753_s28 = smov 16  }
  0xdc   : > { %556 = dma.vmem_to_hbm [thread:$0]  (%p967_p9), %s902_s23, 512, %s907_s4, %s427_s15, %s752_s22, %s752_s22, %s753_s28  }
  0xdd PF: > { %s458_s29 = sand.u32 1, %s722_s12   ;;  %p968_p6 = scmp.ne.s32.totalorder %s964_s27, 0 }
  0xde   : > { %p969_p13 = scmp.ge.s32.totalorder %s742_s17, 2  ;;  %s459_s30 = scalar_lea.sflag [#allocation4], %s458_s29 }
  0xe0   : > { %p563_p2 = pnand %p969_p13, %p968_p6 }
  0xe2   : > { %717 = dma.done.wait (!%p563_p2), %s459_s30, 512  }
  0xe3   : > { %719 = vsyncadd (!%p563_p2), %s459_s30, 4294966784  ;;  %s19_s17 = sadd.s32 1, %s742_s17   ;;  %s970_s12 = smov %s726_s13 }
  0xe4   : > { %p16_p5 = scmp.ge.s32.totalorder %s19_s17, 4   ;;  %s971_s13 = smov %s730_s14 }
  0xe5   : > { %s972_s14 = smov %s830_s26  ;;  %s973_s15 = smov %s738_s16 }
  0xe6   : > { %s974_s16 = smov %s976_s20  ;;  %18 = sbr.rel (!%p16_p5) target bundleno = 6 (0x6), region = 79 }
  0xed   :  { %464 = vsyncpa [#allocation3], 1 }
  0xee   :  { %466 = vsyncpa [#allocation3 + $0x1], 1 }
  0xef   :  { %467 = vsyncpa [#allocation4], 1 }
  0xf0   :  { %469 = vsyncpa [#allocation4 + $0x1], 1 }

</bundles_post_ra>
